<compile_context>
chip_gen: v7x
topology: tpu7x:2x2x1
jax: 0.10.0
libtpu: 0.0.40
codegen_flags: <defaults>
</compile_context>

<pallas_src>
import functools

import jax
import jax.numpy as jnp
from jax.experimental import pallas as pl
from jax.experimental.pallas import tpu as pltpu

A_PAD = 128          # lane-dense padded width of the actor head output
NEG_PAD = -1e30      # logit value stored in padded action columns


def mlp_actor_kernel(obs_ref,
                     w1_ref, b1_ref,
                     w2_ref, b2_ref,
                     w3_ref, b3_ref,
                     w4_ref, b4_ref,
                     logits_ref):
    """Fused 4-layer MLP: 3x (Linear + ReLU) + Linear actor head (padded to 128 lanes).

    Matmul operands are bf16 (MXU-native on v6e/v7x), accumulation and the
    bias/ReLU path are f32.  Padded head columns carry zero weights and a -1e30
    bias, so pad logits come out as -1e30 with no extra kernel ops.
    """
    x = obs_ref[...]                                                     # bf16 [b, 8]

    h = jnp.dot(x, w1_ref[...], preferred_element_type=jnp.float32) + b1_ref[...]
    h = jnp.maximum(h, 0.0)

    h = jnp.dot(h.astype(jnp.bfloat16), w2_ref[...],
                preferred_element_type=jnp.float32) + b2_ref[...]
    h = jnp.maximum(h, 0.0)

    h = jnp.dot(h.astype(jnp.bfloat16), w3_ref[...],
                preferred_element_type=jnp.float32) + b3_ref[...]
    h = jnp.maximum(h, 0.0)

    logits_ref[...] = jnp.dot(h.astype(jnp.bfloat16), w4_ref[...],
                              preferred_element_type=jnp.float32) + b4_ref[...]


@functools.partial(jax.jit, static_argnames=("action_dim", "b_tile"))
def ppo_actor_forward_padded(obs, params, *, action_dim: int, b_tile=None):
    """Batched fused MLP actor.

    obs: [B, state_dim] f32  ->  padded logits [B_pad, 128] f32
    (real logits live in columns [:action_dim]; padded columns are -1e30, padded
     rows are garbage — slice outside the hot loop only if needed).
    """
    B, state_dim = obs.shape
    H = params["w1"].shape[1]

    # K-pad obs to a sublane-aligned 8 columns.
    K_pad = max(8, ((state_dim + 7) // 8) * 8)

    # Tile selection: one grid step for small batches, 1024-row tiles otherwise.
    if b_tile is None:
        b_tile = ((B + 7) // 8) * 8 if B <= 1024 else 1024
    n_tiles = pl.cdiv(B, b_tile)
    B_pad = n_tiles * b_tile

    obs_p = obs
    if B_pad != B or K_pad != state_dim:
        obs_p = jnp.pad(obs, ((0, B_pad - B), (0, K_pad - state_dim)))
    obs_bf = obs_p.astype(jnp.bfloat16)

    # bf16 weights (padded where needed); f32 biases.  Head bias padded with -1e30.
    w1 = jnp.pad(params["w1"], ((0, K_pad - state_dim), (0, 0))).astype(jnp.bfloat16)
    w2 = params["w2"].astype(jnp.bfloat16)
    w3 = params["w3"].astype(jnp.bfloat16)
    w4 = jnp.pad(params["w4"], ((0, 0), (0, A_PAD - action_dim))).astype(jnp.bfloat16)
    b1, b2, b3 = params["b1"], params["b2"], params["b3"]
    b4 = jnp.pad(params["b4"], ((0, 0), (0, A_PAD - action_dim)),
                 constant_values=NEG_PAD)

    # Resident-weight spec: constant block index across grid steps (DMA'd once).
    def resident(shape):
        return pl.BlockSpec(shape, lambda i: (0, 0))

    in_specs = [
        pl.BlockSpec((b_tile, K_pad), lambda i: (i, 0)),   # obs tile (pipelined)
        resident((K_pad, H)), resident((1, H)),            # w1, b1
        resident((H, H)), resident((1, H)),                # w2, b2
        resident((H, H)), resident((1, H)),                # w3, b3
        resident((H, A_PAD)), resident((1, A_PAD)),        # w4 (padded), b4 (padded)
    ]
    out_specs = pl.BlockSpec((b_tile, A_PAD), lambda i: (i, 0))

    flops = 2 * B_pad * (K_pad * H + H * H + H * H + H * A_PAD)
    bytes_accessed = (
        obs_bf.size * 2
        + (w1.size + w2.size + w3.size + w4.size) * 2
        + (b1.size + b2.size + b3.size + b4.size) * 4
        + B_pad * A_PAD * 4
    )

    logits_pad = pl.pallas_call(
        mlp_actor_kernel,
        out_shape=jax.ShapeDtypeStruct((B_pad, A_PAD), jnp.float32),
        grid=(n_tiles,),
        in_specs=in_specs,
        out_specs=out_specs,
        compiler_params=pltpu.CompilerParams(
            dimension_semantics=("parallel",)),
        cost_estimate=pl.CostEstimate(
            flops=flops, transcendentals=0, bytes_accessed=bytes_accessed),
    )(obs_bf, w1, b1, w2, b2, w3, b3, w4, b4)

    return logits_pad


def init_params(key, state_dim, hidden, action_dim):
    """Deterministic synthetic init (PyTorch-Linear-like scaling)."""
    dims = [state_dim, hidden, hidden, hidden, action_dim]
    params = {}
    for i in range(4):
        key, kw, kb = jax.random.split(key, 3)
        bound = 1.0 / jnp.sqrt(float(dims[i]))
        params[f"w{i+1}"] = jax.random.uniform(
            kw, (dims[i], dims[i + 1]), jnp.float32, -bound, bound)
        params[f"b{i+1}"] = jax.random.uniform(
            kb, (1, dims[i + 1]), jnp.float32, -bound, bound)
    return params


def reference_forward_bf16(obs, p):
    """Reference with the same bf16-operand / f32-accumulate matmul recipe."""
    def lin(x, w, b):
        return jnp.dot(x.astype(jnp.bfloat16), w.astype(jnp.bfloat16),
                       preferred_element_type=jnp.float32) + b
    h = jnp.maximum(lin(obs, p["w1"], p["b1"]), 0.0)
    h = jnp.maximum(lin(h, p["w2"], p["b2"]), 0.0)
    h = jnp.maximum(lin(h, p["w3"], p["b3"]), 0.0)
    return lin(h, p["w4"], p["b4"])


def reference_forward_f32(obs, p):
    h = jnp.maximum(obs @ p["w1"] + p["b1"], 0.0)
    h = jnp.maximum(h @ p["w2"] + p["b2"], 0.0)
    h = jnp.maximum(h @ p["w3"] + p["b3"], 0.0)
    return h @ p["w4"] + p["b4"]


if __name__ == "__main__":
    # CartPole-like shapes: state_dim=4, 3 hidden layers of 128, 2 discrete actions.
    # B=256 models a vectorized-env / PPO minibatch; it fits a single grid step.
    B, STATE_DIM, HIDDEN, ACTION_DIM = 256, 4, 128, 2

    key = jax.random.PRNGKey(0)
    key, k_obs = jax.random.split(key)
    obs = jax.random.normal(k_obs, (B, STATE_DIM), jnp.float32)
    params = init_params(key, STATE_DIM, HIDDEN, ACTION_DIM)

    logits_pad = ppo_actor_forward_padded(obs, params, action_dim=ACTION_DIM)
    jax.block_until_ready(logits_pad)

    # Validation (slicing happens only here, outside the jitted hot path).
    logits = logits_pad[:B, :ACTION_DIM]
    ref_bf16 = reference_forward_bf16(obs, params)
    ref_f32 = reference_forward_f32(obs, params)

    assert logits_pad.shape == (B, A_PAD)
    assert logits.shape == (B, ACTION_DIM)
    # Match the bf16-operand reference tightly, the f32 reference loosely.
    assert jnp.allclose(logits, ref_bf16, atol=1e-3, rtol=1e-3)
    assert jnp.allclose(logits, ref_f32, atol=1e-1, rtol=1e-1)
    # Padded action columns are dead (logit ~ -1e30), so the padded layout is
    # safe to feed a Categorical directly.
    assert jnp.all(logits_pad[:B, ACTION_DIM:] < -1e29)

    print("KERNEL_OK")
</pallas_src>

<mosaic_0001>
module attributes {stable_mosaic.version = 11 : i64} {
  func.func @mlp_actor_kernel(%arg0: i32, %arg1: memref<256x8xbf16, #tpu.memory_space<vmem>>, %arg2: memref<8x128xbf16, #tpu.memory_space<vmem>>, %arg3: memref<1x128xf32, #tpu.memory_space<vmem>>, %arg4: memref<128x128xbf16, #tpu.memory_space<vmem>>, %arg5: memref<1x128xf32, #tpu.memory_space<vmem>>, %arg6: memref<128x128xbf16, #tpu.memory_space<vmem>>, %arg7: memref<1x128xf32, #tpu.memory_space<vmem>>, %arg8: memref<128x128xbf16, #tpu.memory_space<vmem>>, %arg9: memref<1x128xf32, #tpu.memory_space<vmem>>, %arg10: memref<256x128xf32, #tpu.memory_space<vmem>>) attributes {dimension_semantics = [#tpu.dimension_semantics<parallel>], iteration_bounds = array<i64: 1>, scalar_prefetch = 0 : i64, scratch_operands = 0 : i64, tpu.core_type = #tpu.core_type<tc>, window_params = [{transform_indices = @transform_0, window_bounds = array<i64: 256, 8>}, {pipeline_mode = #tpu.pipeline_mode<synchronous>, transform_indices = @transform_1, window_bounds = array<i64: 8, 128>}, {pipeline_mode = #tpu.pipeline_mode<synchronous>, transform_indices = @transform_2, window_bounds = array<i64: 1, 128>}, {pipeline_mode = #tpu.pipeline_mode<synchronous>, transform_indices = @transform_3, window_bounds = array<i64: 128, 128>}, {pipeline_mode = #tpu.pipeline_mode<synchronous>, transform_indices = @transform_4, window_bounds = array<i64: 1, 128>}, {pipeline_mode = #tpu.pipeline_mode<synchronous>, transform_indices = @transform_5, window_bounds = array<i64: 128, 128>}, {pipeline_mode = #tpu.pipeline_mode<synchronous>, transform_indices = @transform_6, window_bounds = array<i64: 1, 128>}, {pipeline_mode = #tpu.pipeline_mode<synchronous>, transform_indices = @transform_7, window_bounds = array<i64: 128, 128>}, {pipeline_mode = #tpu.pipeline_mode<synchronous>, transform_indices = @transform_8, window_bounds = array<i64: 1, 128>}, {transform_indices = @transform_9, window_bounds = array<i64: 256, 128>}]} {
    %c0 = arith.constant 0 : index
    %c0_0 = arith.constant 0 : index
    %0 = vector.load %arg1[%c0, %c0_0] : memref<256x8xbf16, #tpu.memory_space<vmem>>, vector<256x8xbf16>
    %c0_1 = arith.constant 0 : index
    %c0_2 = arith.constant 0 : index
    %1 = vector.load %arg2[%c0_1, %c0_2] : memref<8x128xbf16, #tpu.memory_space<vmem>>, vector<8x128xbf16>
    %cst = arith.constant dense<0.000000e+00> : vector<256x128xf32>
    %2 = tpu.matmul %0, %1, %cst {dimension_numbers = #tpu.dot_dimension_numbers<[1], [0], [0], [1], [0, 0, 1, 1], [], []>} : vector<256x8xbf16>, vector<8x128xbf16>, vector<256x128xf32> -> vector<256x128xf32>
    %c0_3 = arith.constant 0 : index
    %c0_4 = arith.constant 0 : index
    %3 = vector.load %arg3[%c0_3, %c0_4] : memref<1x128xf32, #tpu.memory_space<vmem>>, vector<1x128xf32>
    %4 = vector.broadcast %3 : vector<1x128xf32> to vector<256x128xf32>
    %5 = arith.addf %2, %4 : vector<256x128xf32>
    %cst_5 = arith.constant 0.000000e+00 : f32
    %6 = vector.broadcast %cst_5 : f32 to vector<256x128xf32>
    %7 = arith.maximumf %5, %6 : vector<256x128xf32>
    %8 = arith.truncf %7 : vector<256x128xf32> to vector<256x128xbf16>
    %c0_6 = arith.constant 0 : index
    %c0_7 = arith.constant 0 : index
    %9 = vector.load %arg4[%c0_6, %c0_7] : memref<128x128xbf16, #tpu.memory_space<vmem>>, vector<128x128xbf16>
    %cst_8 = arith.constant dense<0.000000e+00> : vector<256x128xf32>
    %10 = tpu.matmul %8, %9, %cst_8 {dimension_numbers = #tpu.dot_dimension_numbers<[1], [0], [0], [1], [0, 0, 1, 1], [], []>} : vector<256x128xbf16>, vector<128x128xbf16>, vector<256x128xf32> -> vector<256x128xf32>
    %c0_9 = arith.constant 0 : index
    %c0_10 = arith.constant 0 : index
    %11 = vector.load %arg5[%c0_9, %c0_10] : memref<1x128xf32, #tpu.memory_space<vmem>>, vector<1x128xf32>
    %12 = vector.broadcast %11 : vector<1x128xf32> to vector<256x128xf32>
    %13 = arith.addf %10, %12 : vector<256x128xf32>
    %cst_11 = arith.constant 0.000000e+00 : f32
    %14 = vector.broadcast %cst_11 : f32 to vector<256x128xf32>
    %15 = arith.maximumf %13, %14 : vector<256x128xf32>
    %16 = arith.truncf %15 : vector<256x128xf32> to vector<256x128xbf16>
    %c0_12 = arith.constant 0 : index
    %c0_13 = arith.constant 0 : index
    %17 = vector.load %arg6[%c0_12, %c0_13] : memref<128x128xbf16, #tpu.memory_space<vmem>>, vector<128x128xbf16>
    %cst_14 = arith.constant dense<0.000000e+00> : vector<256x128xf32>
    %18 = tpu.matmul %16, %17, %cst_14 {dimension_numbers = #tpu.dot_dimension_numbers<[1], [0], [0], [1], [0, 0, 1, 1], [], []>} : vector<256x128xbf16>, vector<128x128xbf16>, vector<256x128xf32> -> vector<256x128xf32>
    %c0_15 = arith.constant 0 : index
    %c0_16 = arith.constant 0 : index
    %19 = vector.load %arg7[%c0_15, %c0_16] : memref<1x128xf32, #tpu.memory_space<vmem>>, vector<1x128xf32>
    %20 = vector.broadcast %19 : vector<1x128xf32> to vector<256x128xf32>
    %21 = arith.addf %18, %20 : vector<256x128xf32>
    %cst_17 = arith.constant 0.000000e+00 : f32
    %22 = vector.broadcast %cst_17 : f32 to vector<256x128xf32>
    %23 = arith.maximumf %21, %22 : vector<256x128xf32>
    %24 = arith.truncf %23 : vector<256x128xf32> to vector<256x128xbf16>
    %c0_18 = arith.constant 0 : index
    %c0_19 = arith.constant 0 : index
    %25 = vector.load %arg8[%c0_18, %c0_19] : memref<128x128xbf16, #tpu.memory_space<vmem>>, vector<128x128xbf16>
    %cst_20 = arith.constant dense<0.000000e+00> : vector<256x128xf32>
    %26 = tpu.matmul %24, %25, %cst_20 {dimension_numbers = #tpu.dot_dimension_numbers<[1], [0], [0], [1], [0, 0, 1, 1], [], []>} : vector<256x128xbf16>, vector<128x128xbf16>, vector<256x128xf32> -> vector<256x128xf32>
    %c0_21 = arith.constant 0 : index
    %c0_22 = arith.constant 0 : index
    %27 = vector.load %arg9[%c0_21, %c0_22] : memref<1x128xf32, #tpu.memory_space<vmem>>, vector<1x128xf32>
    %28 = vector.broadcast %27 : vector<1x128xf32> to vector<256x128xf32>
    %29 = arith.addf %26, %28 : vector<256x128xf32>
    %c0_23 = arith.constant 0 : index
    %c0_24 = arith.constant 0 : index
    %30 = vector.load %arg10[%c0_23, %c0_24] : memref<256x128xf32, #tpu.memory_space<vmem>>, vector<256x128xf32>
    tpu.vector_store %arg10[%c0_23, %c0_24], %29 {strides = array<i32>} : memref<256x128xf32, #tpu.memory_space<vmem>>, vector<256x128xf32>,
    return
  }
  func.func @transform_0(%arg0: i32) -> (i32, i32) {
    %c0_i32 = arith.constant 0 : i32
    %c0_i32_0 = arith.constant 0 : i32
    return %arg0, %c0_i32 : i32, i32
  }
  func.func @transform_1(%arg0: i32) -> (i32, i32) {
    %c0_i32 = arith.constant 0 : i32
    %c0_i32_0 = arith.constant 0 : i32
    %c0_i32_1 = arith.constant 0 : i32
    return %c0_i32, %c0_i32_0 : i32, i32
  }
  func.func @transform_2(%arg0: i32) -> (i32, i32) {
    %c0_i32 = arith.constant 0 : i32
    %c0_i32_0 = arith.constant 0 : i32
    %c0_i32_1 = arith.constant 0 : i32
    return %c0_i32, %c0_i32_0 : i32, i32
  }
  func.func @transform_3(%arg0: i32) -> (i32, i32) {
    %c0_i32 = arith.constant 0 : i32
    %c0_i32_0 = arith.constant 0 : i32
    %c0_i32_1 = arith.constant 0 : i32
    return %c0_i32, %c0_i32_0 : i32, i32
  }
  func.func @transform_4(%arg0: i32) -> (i32, i32) {
    %c0_i32 = arith.constant 0 : i32
    %c0_i32_0 = arith.constant 0 : i32
    %c0_i32_1 = arith.constant 0 : i32
    return %c0_i32, %c0_i32_0 : i32, i32
  }
  func.func @transform_5(%arg0: i32) -> (i32, i32) {
    %c0_i32 = arith.constant 0 : i32
    %c0_i32_0 = arith.constant 0 : i32
    %c0_i32_1 = arith.constant 0 : i32
    return %c0_i32, %c0_i32_0 : i32, i32
  }
  func.func @transform_6(%arg0: i32) -> (i32, i32) {
    %c0_i32 = arith.constant 0 : i32
    %c0_i32_0 = arith.constant 0 : i32
    %c0_i32_1 = arith.constant 0 : i32
    return %c0_i32, %c0_i32_0 : i32, i32
  }
  func.func @transform_7(%arg0: i32) -> (i32, i32) {
    %c0_i32 = arith.constant 0 : i32
    %c0_i32_0 = arith.constant 0 : i32
    %c0_i32_1 = arith.constant 0 : i32
    return %c0_i32, %c0_i32_0 : i32, i32
  }
  func.func @transform_8(%arg0: i32) -> (i32, i32) {
    %c0_i32 = arith.constant 0 : i32
    %c0_i32_0 = arith.constant 0 : i32
    %c0_i32_1 = arith.constant 0 : i32
    return %c0_i32, %c0_i32_0 : i32, i32
  }
  func.func @transform_9(%arg0: i32) -> (i32, i32) {
    %c0_i32 = arith.constant 0 : i32
    %c0_i32_0 = arith.constant 0 : i32
    return %arg0, %c0_i32 : i32, i32
  }
}

</mosaic_0001>

<bundles_post_ra>
// kernel: ppo_actor_forward_padded.1
= control target key start
LH: loop header
LB: loop body
LE: loop exit
PB: predicated region body
PF: predicated region fallthrough
CT: control target
= control target key end

     0   :  { %vm203_vm0 = vcmask 1043456   ;;  %vm154_vm1 = vcmask 64512   ;;  %s2037_s0 = inlined_call_operand.vmem [shape: bf16[256,8], index: 0, kind: input, shape index: {}]   ;;  %s2038_s1 = inlined_call_operand.vmem [shape: bf16[8,128], index: 1, kind: input, shape index: {}]   ;;  %s2039_s2 = inlined_call_operand.vmem [shape: f32[1,128], index: 2, kind: input, shape index: {}]   ;;  %s2040_s3 = inlined_call_operand.vmem [shape: bf16[128,128], index: 3, kind: input, shape index: {}]   ;;  %s2041_s4 = inlined_call_operand.vmem [shape: f32[1,128], index: 4, kind: input, shape index: {}]   ;;  %s2042_s5 = inlined_call_operand.vmem [shape: bf16[128,128], index: 5, kind: input, shape index: {}]   ;;  %s2043_s6 = inlined_call_operand.vmem [shape: f32[1,128], index: 6, kind: input, shape index: {}]   ;;  %s2044_s7 = inlined_call_operand.vmem [shape: bf16[128,128], index: 7, kind: input, shape index: {}]   ;;  %s2045_s8 = inlined_call_operand.vmem [shape: f32[1,128], index: 8, kind: input, shape index: {}]   ;;  %s2046_s9 = inlined_call_operand.hbm [shape: f32[256,128], index: 9, kind: output, shape index: {}]  }
   0x1   :  { %v66_v0 = vld [vmem:[%s2038_s1] sm:$0xf]  ;;  %v1604_v3 = vld [vmem:[%s2037_s0 + $0x8] sm:$0xff]   ;;  %v1605_v4 = vld [vmem:[%s2037_s0 + $0x10] sm:$0xff]  }
   0x2   :  { %v1603_v1 = vld [vmem:[%s2037_s0] sm:$0xff]   ;;  %1599 = vmatprep.subr.msk.bf16.mxu0 %vm203_vm0, %v66_v0  ;;  %v205_v2 = vsel %vm203_vm0, %v66_v0, 0  ;;  %v1606_v5 = vld [vmem:[%s2037_s0 + $0x18] sm:$0xff]   ;;  %v1608_v7 = vld [vmem:[%s2037_s0 + $0x28] sm:$0xff]  }
   0x3   :  { %1406 = vmatpush3.bf16.msra.mxu0 %v205_v2  ;;  %1407 = vmatprep.mubr.msk.bf16.mxu0 %vm154_vm1, %v1603_v1  ;;  %v1607_v6 = vld [vmem:[%s2037_s0 + $0x20] sm:$0xff]   ;;  %v1609_v8 = vld [vmem:[%s2037_s0 + $0x30] sm:$0xff]   ;;  %v1620_v10 = vld [vmem:[%s2040_s3 + $0x8] sm:$0xff]  }
   0x4   :  { %v1619_v9 = vld [vmem:[%s2040_s3] sm:$0xff]   ;;  %v1621_v11 = vld [vmem:[%s2040_s3 + $0x10] sm:$0xff]   ;;  %v1610_v12 = vld [vmem:[%s2037_s0 + $0x38] sm:$0xff]  }
   0x5   :  { %1439 = vmatprep.subr.bf16.mxu1 %v1619_v9  ;;  %v1622_v13 = vld [vmem:[%s2040_s3 + $0x18] sm:$0xff]   ;;  %v1611_v14 = vld [vmem:[%s2037_s0 + $0x40] sm:$0xff]   ;;  %v1612_v16 = vld [vmem:[%s2037_s0 + $0x48] sm:$0xff]  }
   0x6   :  { %1408 = vmatmul.mubr.msk.bf16.vlgmr.msra.gmra.mrb[0].mxu0 %vm154_vm1, %v1604_v3  ;;  %1440 = vmatpush3.bf16.msra.mxu1 %v1619_v9  ;;  %v1623_v15 = vld [vmem:[%s2040_s3 + $0x20] sm:$0xff]   ;;  %v1624_v17 = vld [vmem:[%s2040_s3 + $0x28] sm:$0xff]   ;;  %v1613_v18 = vld [vmem:[%s2037_s0 + $0x50] sm:$0xff]  }
   0x7   :  { %1411 = vmatprep.mubr.msk.bf16.mxu0 %vm154_vm1, %v1605_v4  ;;  %1441 = vmatprep.subr.bf16.mxu1 %v1620_v10 }
   0xa   :  { %1442 = vmatpush3.bf16.msra.mxu1 %v1620_v10 }
   0xb   :  { %1443 = vmatprep.subr.bf16.mxu1 %v1621_v11 }
   0xe   :  { %1412 = vmatmul.mubr.msk.bf16.gmra.mrb[4].mxu0 %vm154_vm1, %v1606_v5  ;;  %1444 = vmatpush3.bf16.msra.mxu1 %v1621_v11 }
   0xf   :  { %1415 = vmatprep.mubr.msk.bf16.mxu0 %vm154_vm1, %v1607_v6  ;;  %1445 = vmatprep.subr.bf16.mxu1 %v1622_v13 }
  0x12   :  { %1446 = vmatpush3.bf16.msra.mxu1 %v1622_v13 }
  0x13   :  { %1447 = vmatprep.subr.bf16.mxu1 %v1623_v15 }
  0x16   :  { %1416 = vmatmul.mubr.msk.bf16.gmra.mrb[8].mxu0 %vm154_vm1, %v1608_v7 }
  0x17   :  { %1419 = vmatprep.mubr.msk.bf16.mxu0 %vm154_vm1, %v1609_v8 }
  0x1e   :  { %1420 = vmatmul.mubr.msk.bf16.gmra.mrb[12].mxu0 %vm154_vm1, %v1610_v12 }
  0x1f   :  { %1423 = vmatprep.mubr.msk.bf16.mxu0 %vm154_vm1, %v1611_v14 }
  0x20   :  { %14 = vsyncpa [#allocation3], 0  ;;  %1448 = vmatpush3.bf16.msra.mxu1 %v1623_v15  ;;  %v1614_v19 = vld [vmem:[%s2037_s0 + $0x58] sm:$0xff]   ;;  %v1615_v20 = vld [vmem:[%s2037_s0 + $0x60] sm:$0xff]  }
  0x21   :  { %1449 = vmatprep.subr.bf16.mxu1 %v1624_v17  ;;  %v1616_v21 = vld [vmem:[%s2037_s0 + $0x68] sm:$0xff]   ;;  %v1617_v22 = vld [vmem:[%s2037_s0 + $0x70] sm:$0xff]   ;;  %v1618_v23 = vld [vmem:[%s2037_s0 + $0x78] sm:$0xff]  }
  0x22   :  { %v1625_v24 = vld [vmem:[%s2040_s3 + $0x30] sm:$0xff]   ;;  %v1626_v25 = vld [vmem:[%s2040_s3 + $0x38] sm:$0xff]   ;;  %v1627_v26 = vld [vmem:[%s2042_s5] sm:$0xff]  }
  0x23   :  { %v1628_v27 = vld [vmem:[%s2042_s5 + $0x8] sm:$0xff]   ;;  %1487 = vmatprep.subr.bf16.mxu0 %v1627_v26  ;;  %v1629_v28 = vld [vmem:[%s2042_s5 + $0x10] sm:$0xff]   ;;  %v1630_v29 = vld [vmem:[%s2042_s5 + $0x18] sm:$0xff]  }
  0x24   :  { %1450 = vmatpush3.bf16.msra.mxu1 %v1624_v17  ;;  %1488 = vmatpush3.bf16.msra.mxu0 %v1627_v26  ;;  %v1631_v30 = vld [vmem:[%s2042_s5 + $0x20] sm:$0xff]   ;;  %v1632_v31 = vld [vmem:[%s2042_s5 + $0x28] sm:$0xff]   ;;  %v1633_v32 = vld [vmem:[%s2042_s5 + $0x30] sm:$0xff]  }
  0x25   :  { %1451 = vmatprep.subr.bf16.mxu1 %v1625_v24  ;;  %1489 = vmatprep.subr.bf16.mxu0 %v1628_v27  ;;  %v1835_v33 = vld [vmem:[%s2039_s2] ss:$0 sm:$0xff] }
  0x26   :  { %1424 = vmatmul.mubr.msk.bf16.gmra.mrb[16].mxu0 %vm154_vm1, %v1612_v16 }
  0x27   :  { %1427 = vmatprep.mubr.msk.bf16.mxu0 %vm154_vm1, %v1613_v18 }
  0x28   :  { %1452 = vmatpush3.bf16.msra.mxu1 %v1625_v24  ;;  %1490 = vmatpush3.bf16.msra.mxu0 %v1628_v27 }
  0x29   :  { %1453 = vmatprep.subr.bf16.mxu1 %v1626_v25  ;;  %1491 = vmatprep.subr.bf16.mxu0 %v1629_v28 }
  0x2c   :  { %1454 = vmatpush3.bf16.msra.mxu1 %v1626_v25  ;;  %1492 = vmatpush3.bf16.msra.mxu0 %v1629_v28 }
  0x2d   :  { %1493 = vmatprep.subr.bf16.mxu0 %v1630_v29 }
  0x2e   :  { %1428 = vmatmul.mubr.msk.bf16.gmra.mrb[20].mxu0 %vm154_vm1, %v1614_v19 }
  0x2f   :  { %1431 = vmatprep.mubr.msk.bf16.mxu0 %vm154_vm1, %v1615_v20 }
  0x30   :  { %1494 = vmatpush3.bf16.msra.mxu0 %v1630_v29 }
  0x31   :  { %1495 = vmatprep.subr.bf16.mxu0 %v1631_v30 }
  0x34   :  { %1496 = vmatpush3.bf16.msra.mxu0 %v1631_v30 }
  0x35   :  { %1497 = vmatprep.subr.bf16.mxu0 %v1632_v31 }
  0x36   :  { %1432 = vmatmul.mubr.msk.bf16.gmra.mrb[24].mxu0 %vm154_vm1, %v1616_v21 }
  0x37   :  { %1435 = vmatprep.mubr.msk.bf16.mxu0 %vm154_vm1, %v1617_v22 }
  0x38   :  { %1498 = vmatpush3.bf16.msra.mxu0 %v1632_v31 }
  0x39   :  { %1499 = vmatprep.subr.bf16.mxu0 %v1633_v32 }
  0x3c   :  { %1500 = vmatpush3.bf16.msra.mxu0 %v1633_v32 }
  0x3e   :  { %1436 = vmatmul.mubr.msk.bf16.gmra.mrb[28].mxu0 %vm154_vm1, %v1618_v23 }
  0xd9   :  { %v1409_v34 = vpop.f32.mrb[0].mxu0 }
  0xda   :  { %v250_v35 = vadd.f32 %v1409_v34, %v1835_v33  ;;  %v241_v36 = vpop.f32.mrb[1].mxu0 }
  0xdb   :  { %v242_v37 = vadd.f32 %v1835_v33, %v241_v36  ;;  %v1410_v38 = vpop.f32.mrb[2].mxu0 }
  0xdc   :  { %v253_v39 = vadd.f32 %v1410_v38, %v1835_v33  ;;  %v244_v40 = vpop.f32.mrb[3].mxu0  ;;  %v370_v42 = vmax.f32 %v250_v35, 0.0 }
  0xdd   :  { %v245_v41 = vadd.f32 %v1835_v33, %v244_v40  ;;  %v368_v44 = vmax.f32 %v242_v37, 0.0 }
  0xde   :  { %v371_v43 = vmax.f32 %v253_v39, 0.0 }
  0xdf   :  { %v369_v45 = vmax.f32 %v245_v41, 0.0 }
  0xe0   :  { %v401_v46 = vpack.c.bf16 %v371_v43, %v370_v42 }
  0xe1   :  { %v1413_v47 = vpop.f32.mrb[4].mxu0  ;;  %v400_v48 = vpack.c.bf16 %v369_v45, %v368_v44 }
  0xe2   :  { %v266_v49 = vadd.f32 %v1413_v47, %v1835_v33  ;;  %v257_v50 = vpop.f32.mrb[5].mxu0 }
  0xe3   :  { %v258_v51 = vadd.f32 %v1835_v33, %v257_v50  ;;  %v1414_v52 = vpop.f32.mrb[6].mxu0  ;;  %1455 = vmatprep.mubr.bf16.mxu1 %v400_v48 }
  0xe4   :  { %v269_v53 = vadd.f32 %v1414_v52, %v1835_v33  ;;  %v260_v54 = vpop.f32.mrb[7].mxu0  ;;  %1456 = vmatmul.mubr.bf16.vlgmr.msra.gmra.mrb[0].mxu1 %v401_v46  ;;  %v374_v56 = vmax.f32 %v266_v49, 0.0 }
  0xe5   :  { %v261_v55 = vadd.f32 %v1835_v33, %v260_v54  ;;  %v372_v58 = vmax.f32 %v258_v51, 0.0 }
  0xe6   :  { %v375_v57 = vmax.f32 %v269_v53, 0.0 }
  0xe7   :  { %v373_v59 = vmax.f32 %v261_v55, 0.0 }
  0xe8   :  { %v403_v60 = vpack.c.bf16 %v375_v57, %v374_v56 }
  0xe9   :  { %v402_v61 = vpack.c.bf16 %v373_v59, %v372_v58  ;;  %v1417_v62 = vpop.f32.mrb[8].mxu0 }
  0xea   :  { %v282_v63 = vadd.f32 %v1417_v62, %v1835_v33  ;;  %v273_v0 = vpop.f32.mrb[9].mxu0 }
  0xeb   :  { %v274_v1 = vadd.f32 %v1835_v33, %v273_v0  ;;  %v1418_v2 = vpop.f32.mrb[10].mxu0  ;;  %1459 = vmatprep.mubr.bf16.mxu1 %v402_v61 }
  0xec   :  { %v285_v3 = vadd.f32 %v1418_v2, %v1835_v33  ;;  %v276_v4 = vpop.f32.mrb[11].mxu0  ;;  %1460 = vmatmul.mubr.bf16.gmra.mrb[4].mxu1 %v403_v60  ;;  %v378_v6 = vmax.f32 %v282_v63, 0.0 }
  0xed   :  { %v277_v5 = vadd.f32 %v1835_v33, %v276_v4  ;;  %v376_v8 = vmax.f32 %v274_v1, 0.0 }
  0xee   :  { %v379_v7 = vmax.f32 %v285_v3, 0.0 }
  0xef   :  { %v377_v9 = vmax.f32 %v277_v5, 0.0 }
  0xf0   :  { %v405_v10 = vpack.c.bf16 %v379_v7, %v378_v6 }
  0xf1   :  { %v404_v11 = vpack.c.bf16 %v377_v9, %v376_v8  ;;  %v1421_v12 = vpop.f32.mrb[12].mxu0 }
  0xf2   :  { %v298_v13 = vadd.f32 %v1421_v12, %v1835_v33  ;;  %v289_v14 = vpop.f32.mrb[13].mxu0 }
  0xf3   :  { %v290_v15 = vadd.f32 %v1835_v33, %v289_v14  ;;  %v1422_v16 = vpop.f32.mrb[14].mxu0  ;;  %1463 = vmatprep.mubr.bf16.mxu1 %v404_v11 }
  0xf4   :  { %v301_v17 = vadd.f32 %v1422_v16, %v1835_v33  ;;  %v292_v18 = vpop.f32.mrb[15].mxu0  ;;  %1464 = vmatmul.mubr.bf16.gmra.mrb[8].mxu1 %v405_v10  ;;  %v382_v20 = vmax.f32 %v298_v13, 0.0 }
  0xf5   :  { %v293_v19 = vadd.f32 %v1835_v33, %v292_v18  ;;  %v380_v22 = vmax.f32 %v290_v15, 0.0 }
  0xf6   :  { %v383_v21 = vmax.f32 %v301_v17, 0.0 }
  0xf7   :  { %v381_v23 = vmax.f32 %v293_v19, 0.0  ;;  %v1634_v19 = vld [vmem:[%s2042_s5 + $0x38] sm:$0xff]  }
  0xf8   :  { %v407_v24 = vpack.c.bf16 %v383_v21, %v382_v20  ;;  %1501 = vmatprep.subr.bf16.mxu0 %v1634_v19  ;;  %v1635_v20 = vld [vmem:[%s2044_s7] sm:$0xff]   ;;  %v1637_v21 = vld [vmem:[%s2044_s7 + $0x10] sm:$0xff]  }
  0xf9   :  { %v406_v25 = vpack.c.bf16 %v381_v23, %v380_v22  ;;  %v1425_v26 = vpop.f32.mrb[16].mxu0  ;;  %1502 = vmatpush3.bf16.msra.mxu0 %v1634_v19  ;;  %1583 = vmatprep.subr.bf16.mxu1 %v1635_v20  ;;  %v1884_v22 = vld [vmem:[%s2044_s7 + $0x18] sm:$0xff]   ;;  %v1890_v23 = vld [vmem:[%s2044_s7 + $0x20] sm:$0xff]  }
  0xfa   :  { %v314_v27 = vadd.f32 %v1425_v26, %v1835_v33  ;;  %v305_v28 = vpop.f32.mrb[17].mxu0  ;;  %1535 = vmatprep.subr.bf16.mxu0 %v1635_v20  ;;  %1591 = vmatpush3.bf16.msra.mxu1 %v1635_v20 }
  0xfb   :  { %v306_v29 = vadd.f32 %v1835_v33, %v305_v28  ;;  %v1426_v30 = vpop.f32.mrb[18].mxu0  ;;  %1467 = vmatprep.mubr.bf16.mxu1 %v406_v25  ;;  %v1905_v25 = vld [vmem:[%s2041_s4] ss:$0 sm:$0xff] }
  0xfc   :  { %v317_v31 = vadd.f32 %v1426_v30, %v1835_v33  ;;  %v308_v32 = vpop.f32.mrb[19].mxu0  ;;  %1468 = vmatmul.mubr.bf16.gmra.mrb[12].mxu1 %v407_v24  ;;  %v386_v35 = vmax.f32 %v314_v27, 0.0  ;;  %v1897_v24 = vld [vmem:[%s2044_s7 + $0x28] sm:$0xff]  }
  0xfd   :  { %v309_v34 = vadd.f32 %v1835_v33, %v308_v32  ;;  %v384_v37 = vmax.f32 %v306_v29, 0.0 }
  0xfe   :  { %v387_v36 = vmax.f32 %v317_v31, 0.0 }
  0xff   :  { %v385_v38 = vmax.f32 %v309_v34, 0.0 }
 0x100   :  { %v409_v39 = vpack.c.bf16 %v387_v36, %v386_v35 }
 0x101   :  { %v408_v40 = vpack.c.bf16 %v385_v38, %v384_v37  ;;  %v1429_v41 = vpop.f32.mrb[20].mxu0 }
 0x102   :  { %v330_v42 = vadd.f32 %v1429_v41, %v1835_v33  ;;  %v321_v43 = vpop.f32.mrb[21].mxu0 }
 0x103   :  { %v322_v44 = vadd.f32 %v1835_v33, %v321_v43  ;;  %v1430_v45 = vpop.f32.mrb[22].mxu0  ;;  %1471 = vmatprep.mubr.bf16.mxu1 %v408_v40 }
 0x104   :  { %v333_v46 = vadd.f32 %v1430_v45, %v1835_v33  ;;  %v324_v47 = vpop.f32.mrb[23].mxu0  ;;  %1472 = vmatmul.mubr.bf16.gmra.mrb[16].mxu1 %v409_v39  ;;  %v390_v49 = vmax.f32 %v330_v42, 0.0 }
 0x105   :  { %v325_v48 = vadd.f32 %v1835_v33, %v324_v47  ;;  %v388_v51 = vmax.f32 %v322_v44, 0.0 }
 0x106   :  { %v391_v50 = vmax.f32 %v333_v46, 0.0 }
 0x107   :  { %v389_v52 = vmax.f32 %v325_v48, 0.0 }
 0x108   :  { %v411_v53 = vpack.c.bf16 %v391_v50, %v390_v49 }
 0x109   :  { %v410_v54 = vpack.c.bf16 %v389_v52, %v388_v51  ;;  %v1433_v55 = vpop.f32.mrb[24].mxu0 }
 0x10a   :  { %v346_v56 = vadd.f32 %v1433_v55, %v1835_v33  ;;  %v337_v57 = vpop.f32.mrb[25].mxu0 }
 0x10b   :  { %v338_v58 = vadd.f32 %v1835_v33, %v337_v57  ;;  %v1434_v59 = vpop.f32.mrb[26].mxu0  ;;  %1475 = vmatprep.mubr.bf16.mxu1 %v410_v54 }
 0x10c   :  { %v349_v60 = vadd.f32 %v1434_v59, %v1835_v33  ;;  %v340_v61 = vpop.f32.mrb[27].mxu0  ;;  %1476 = vmatmul.mubr.bf16.gmra.mrb[20].mxu1 %v411_v53  ;;  %v394_v63 = vmax.f32 %v346_v56, 0.0 }
 0x10d   :  { %v341_v62 = vadd.f32 %v1835_v33, %v340_v61  ;;  %v392_v1 = vmax.f32 %v338_v58, 0.0 }
 0x10e   :  { %v395_v0 = vmax.f32 %v349_v60, 0.0 }
 0x10f   :  { %v393_v2 = vmax.f32 %v341_v62, 0.0 }
 0x110   :  { %v413_v3 = vpack.c.bf16 %v395_v0, %v394_v63 }
 0x111   :  { %v412_v4 = vpack.c.bf16 %v393_v2, %v392_v1  ;;  %v1437_v5 = vpop.f32.mrb[28].mxu0 }
 0x112   :  { %v362_v6 = vadd.f32 %v1437_v5, %v1835_v33  ;;  %v353_v7 = vpop.f32.mrb[29].mxu0 }
 0x113   :  { %v354_v8 = vadd.f32 %v1835_v33, %v353_v7  ;;  %v1438_v9 = vpop.f32.mrb[30].mxu0  ;;  %1479 = vmatprep.mubr.bf16.mxu1 %v412_v4 }
 0x114   :  { %v365_v10 = vadd.f32 %v1438_v9, %v1835_v33  ;;  %v356_v11 = vpop.f32.mrb[31].mxu0  ;;  %1480 = vmatmul.mubr.bf16.gmra.mrb[24].mxu1 %v413_v3  ;;  %v398_v13 = vmax.f32 %v362_v6, 0.0 }
 0x115   :  { %v357_v12 = vadd.f32 %v1835_v33, %v356_v11  ;;  %v396_v15 = vmax.f32 %v354_v8, 0.0  ;;  %v1636_v33 = vld [vmem:[%s2044_s7 + $0x8] sm:$0xff]  }
 0x116   :  { %v399_v14 = vmax.f32 %v365_v10, 0.0  ;;  %1584 = vmatprep.subr.bf16.mxu1 %v1636_v33 }
 0x117   :  { %v397_v16 = vmax.f32 %v357_v12, 0.0  ;;  %1592 = vmatpush3.bf16.msra.mxu1 %v1636_v33 }
 0x118   :  { %v415_v17 = vpack.c.bf16 %v399_v14, %v398_v13  ;;  %1585 = vmatprep.subr.bf16.mxu1 %v1637_v21 }
 0x119   :  { %v414_v18 = vpack.c.bf16 %v397_v16, %v396_v15 }
 0x11b   :  { %1483 = vmatprep.mubr.bf16.mxu1 %v414_v18  ;;  %1593 = vmatpush3.bf16.msra.mxu1 %v1637_v21 }
 0x11c   :  { %1484 = vmatmul.mubr.bf16.gmra.mrb[28].mxu1 %v415_v17  ;;  %1586 = vmatprep.subr.bf16.mxu1 %v1884_v22 }
 0x11f   :  { %1594 = vmatpush3.bf16.msra.mxu1 %v1884_v22 }
 0x120   :  { %1587 = vmatprep.subr.bf16.mxu1 %v1890_v23 }
 0x123   :  { %1595 = vmatpush3.bf16.msra.mxu1 %v1890_v23 }
 0x124   :  { %1588 = vmatprep.subr.bf16.mxu1 %v1897_v24 }
 0x127   :  { %1596 = vmatpush3.bf16.msra.mxu1 %v1897_v24 }
 0x1b7   :  { %v1457_v26 = vpop.f32.mrb[0].mxu1 }
 0x1b8   :  { %v530_v27 = vadd.f32 %v1457_v26, %v1905_v25  ;;  %v521_v28 = vpop.f32.mrb[1].mxu1 }
 0x1b9   :  { %v522_v29 = vadd.f32 %v1905_v25, %v521_v28  ;;  %v1458_v30 = vpop.f32.mrb[2].mxu1 }
 0x1ba   :  { %v533_v31 = vadd.f32 %v1458_v30, %v1905_v25  ;;  %v524_v32 = vpop.f32.mrb[3].mxu1  ;;  %v650_v35 = vmax.f32 %v530_v27, 0.0 }
 0x1bb   :  { %v525_v34 = vadd.f32 %v1905_v25, %v524_v32  ;;  %v648_v37 = vmax.f32 %v522_v29, 0.0 }
 0x1bc   :  { %v651_v36 = vmax.f32 %v533_v31, 0.0 }
 0x1bd   :  { %v649_v38 = vmax.f32 %v525_v34, 0.0 }
 0x1be   :  { %v681_v39 = vpack.c.bf16 %v651_v36, %v650_v35 }
 0x1bf   :  { %v680_v40 = vpack.c.bf16 %v649_v38, %v648_v37  ;;  %v1461_v41 = vpop.f32.mrb[4].mxu1 }
 0x1c0   :  { %v546_v42 = vadd.f32 %v1461_v41, %v1905_v25  ;;  %v537_v43 = vpop.f32.mrb[5].mxu1 }
 0x1c1   :  { %v538_v44 = vadd.f32 %v1905_v25, %v537_v43  ;;  %v1462_v45 = vpop.f32.mrb[6].mxu1  ;;  %1503 = vmatprep.mubr.bf16.mxu0 %v680_v40 }
 0x1c2   :  { %v549_v46 = vadd.f32 %v1462_v45, %v1905_v25  ;;  %v540_v47 = vpop.f32.mrb[7].mxu1  ;;  %1504 = vmatmul.mubr.bf16.vlgmr.msra.gmra.mrb[32].mxu0 %v681_v39  ;;  %v654_v49 = vmax.f32 %v546_v42, 0.0 }
 0x1c3   :  { %v541_v48 = vadd.f32 %v1905_v25, %v540_v47  ;;  %1536 = vmatpush3.bf16.msra.mxu0 %v1635_v20  ;;  %v652_v51 = vmax.f32 %v538_v44, 0.0 }
 0x1c4   :  { %v655_v50 = vmax.f32 %v549_v46, 0.0  ;;  %1537 = vmatprep.subr.bf16.mxu0 %v1636_v33 }
 0x1c5   :  { %v653_v52 = vmax.f32 %v541_v48, 0.0 }
 0x1c6   :  { %v683_v53 = vpack.c.bf16 %v655_v50, %v654_v49 }
 0x1c7   :  { %v682_v54 = vpack.c.bf16 %v653_v52, %v652_v51  ;;  %v1465_v55 = vpop.f32.mrb[8].mxu1  ;;  %1538 = vmatpush3.bf16.msra.mxu0 %v1636_v33 }
 0x1c8   :  { %v562_v56 = vadd.f32 %v1465_v55, %v1905_v25  ;;  %v553_v57 = vpop.f32.mrb[9].mxu1  ;;  %1539 = vmatprep.subr.bf16.mxu0 %v1637_v21 }
 0x1c9   :  { %v554_v58 = vadd.f32 %v1905_v25, %v553_v57  ;;  %v1466_v59 = vpop.f32.mrb[10].mxu1  ;;  %1507 = vmatprep.mubr.bf16.mxu0 %v682_v54 }
 0x1ca   :  { %v565_v60 = vadd.f32 %v1466_v59, %v1905_v25  ;;  %v556_v61 = vpop.f32.mrb[11].mxu1  ;;  %1508 = vmatmul.mubr.bf16.gmra.mrb[36].mxu0 %v683_v53  ;;  %v658_v63 = vmax.f32 %v562_v56, 0.0 }
 0x1cb   :  { %v557_v62 = vadd.f32 %v1905_v25, %v556_v61  ;;  %1540 = vmatpush3.bf16.msra.mxu0 %v1637_v21  ;;  %v656_v1 = vmax.f32 %v554_v58, 0.0 }
 0x1cc   :  { %v659_v0 = vmax.f32 %v565_v60, 0.0  ;;  %1541 = vmatprep.subr.bf16.mxu0 %v1884_v22 }
 0x1cd   :  { %v657_v2 = vmax.f32 %v557_v62, 0.0 }
 0x1ce   :  { %v685_v3 = vpack.c.bf16 %v659_v0, %v658_v63 }
 0x1cf   :  { %v684_v4 = vpack.c.bf16 %v657_v2, %v656_v1  ;;  %v1469_v5 = vpop.f32.mrb[12].mxu1  ;;  %1542 = vmatpush3.bf16.msra.mxu0 %v1884_v22 }
 0x1d0   :  { %v578_v6 = vadd.f32 %v1469_v5, %v1905_v25  ;;  %v569_v7 = vpop.f32.mrb[13].mxu1  ;;  %1543 = vmatprep.subr.bf16.mxu0 %v1890_v23 }
 0x1d1   :  { %v570_v8 = vadd.f32 %v1905_v25, %v569_v7  ;;  %v1470_v9 = vpop.f32.mrb[14].mxu1  ;;  %1511 = vmatprep.mubr.bf16.mxu0 %v684_v4 }
 0x1d2   :  { %v581_v10 = vadd.f32 %v1470_v9, %v1905_v25  ;;  %v572_v11 = vpop.f32.mrb[15].mxu1  ;;  %1512 = vmatmul.mubr.bf16.gmra.mrb[40].mxu0 %v685_v3  ;;  %v662_v13 = vmax.f32 %v578_v6, 0.0 }
 0x1d3   :  { %v573_v12 = vadd.f32 %v1905_v25, %v572_v11  ;;  %1544 = vmatpush3.bf16.msra.mxu0 %v1890_v23  ;;  %v660_v15 = vmax.f32 %v570_v8, 0.0 }
 0x1d4   :  { %v663_v14 = vmax.f32 %v581_v10, 0.0  ;;  %1545 = vmatprep.subr.bf16.mxu0 %v1897_v24 }
 0x1d5   :  { %v661_v16 = vmax.f32 %v573_v12, 0.0  ;;  %v1641_v12 = vld [vmem:[%s2044_s7 + $0x30] sm:$0xff]  }
 0x1d6   :  { %v687_v17 = vpack.c.bf16 %v663_v14, %v662_v13  ;;  %1589 = vmatprep.subr.bf16.mxu1 %v1641_v12  ;;  %v1954_v13 = vld [vmem:[%s2043_s6] ss:$0 sm:$0xff] }
 0x1d7   :  { %v686_v18 = vpack.c.bf16 %v661_v16, %v660_v15  ;;  %v1473_v19 = vpop.f32.mrb[16].mxu1  ;;  %1546 = vmatpush3.bf16.msra.mxu0 %v1897_v24  ;;  %1597 = vmatpush3.bf16.msra.mxu1 %v1641_v12 }
 0x1d8   :  { %v594_v20 = vadd.f32 %v1473_v19, %v1905_v25  ;;  %v585_v33 = vpop.f32.mrb[17].mxu1  ;;  %1547 = vmatprep.subr.bf16.mxu0 %v1641_v12 }
 0x1d9   :  { %v586_v21 = vadd.f32 %v1905_v25, %v585_v33  ;;  %v1474_v22 = vpop.f32.mrb[18].mxu1  ;;  %1515 = vmatprep.mubr.bf16.mxu0 %v686_v18 }
 0x1da   :  { %v597_v23 = vadd.f32 %v1474_v22, %v1905_v25  ;;  %v588_v26 = vpop.f32.mrb[19].mxu1  ;;  %1516 = vmatmul.mubr.bf16.gmra.mrb[44].mxu0 %v687_v17  ;;  %v666_v28 = vmax.f32 %v594_v20, 0.0 }
 0x1db   :  { %v589_v27 = vadd.f32 %v1905_v25, %v588_v26  ;;  %v664_v30 = vmax.f32 %v586_v21, 0.0  ;;  %1548 = vmatpush3.bf16.msra.mxu0 %v1641_v12 }
 0x1dc   :  { %v667_v29 = vmax.f32 %v597_v23, 0.0 }
 0x1dd   :  { %v665_v31 = vmax.f32 %v589_v27, 0.0 }
 0x1de   :  { %v689_v32 = vpack.c.bf16 %v667_v29, %v666_v28 }
 0x1df   :  { %v688_v34 = vpack.c.bf16 %v665_v31, %v664_v30  ;;  %v1477_v24 = vpop.f32.mrb[20].mxu1 }
 0x1e0   :  { %v610_v35 = vadd.f32 %v1477_v24, %v1905_v25  ;;  %v601_v36 = vpop.f32.mrb[21].mxu1 }
 0x1e1   :  { %v602_v37 = vadd.f32 %v1905_v25, %v601_v36  ;;  %v1478_v38 = vpop.f32.mrb[22].mxu1  ;;  %1519 = vmatprep.mubr.bf16.mxu0 %v688_v34 }
 0x1e2   :  { %v613_v39 = vadd.f32 %v1478_v38, %v1905_v25  ;;  %v604_v40 = vpop.f32.mrb[23].mxu1  ;;  %1520 = vmatmul.mubr.bf16.gmra.mrb[48].mxu0 %v689_v32  ;;  %v670_v42 = vmax.f32 %v610_v35, 0.0 }
 0x1e3   :  { %v605_v41 = vadd.f32 %v1905_v25, %v604_v40  ;;  %v668_v44 = vmax.f32 %v602_v37, 0.0 }
 0x1e4   :  { %v671_v43 = vmax.f32 %v613_v39, 0.0 }
 0x1e5   :  { %v669_v45 = vmax.f32 %v605_v41, 0.0 }
 0x1e6   :  { %v691_v46 = vpack.c.bf16 %v671_v43, %v670_v42 }
 0x1e7   :  { %v690_v47 = vpack.c.bf16 %v669_v45, %v668_v44  ;;  %v1481_v48 = vpop.f32.mrb[24].mxu1 }
 0x1e8   :  { %v626_v49 = vadd.f32 %v1481_v48, %v1905_v25  ;;  %v617_v50 = vpop.f32.mrb[25].mxu1 }
 0x1e9   :  { %v618_v51 = vadd.f32 %v1905_v25, %v617_v50  ;;  %v1482_v52 = vpop.f32.mrb[26].mxu1  ;;  %1523 = vmatprep.mubr.bf16.mxu0 %v690_v47 }
 0x1ea   :  { %v629_v53 = vadd.f32 %v1482_v52, %v1905_v25  ;;  %v620_v54 = vpop.f32.mrb[27].mxu1  ;;  %1524 = vmatmul.mubr.bf16.gmra.mrb[52].mxu0 %v691_v46  ;;  %v674_v56 = vmax.f32 %v626_v49, 0.0 }
 0x1eb   :  { %v621_v55 = vadd.f32 %v1905_v25, %v620_v54  ;;  %v672_v58 = vmax.f32 %v618_v51, 0.0 }
 0x1ec   :  { %v675_v57 = vmax.f32 %v629_v53, 0.0 }
 0x1ed   :  { %v673_v59 = vmax.f32 %v621_v55, 0.0 }
 0x1ee   :  { %v693_v60 = vpack.c.bf16 %v675_v57, %v674_v56 }
 0x1ef   :  { %v692_v61 = vpack.c.bf16 %v673_v59, %v672_v58  ;;  %v1485_v62 = vpop.f32.mrb[28].mxu1 }
 0x1f0   :  { %v642_v63 = vadd.f32 %v1485_v62, %v1905_v25  ;;  %v633_v0 = vpop.f32.mrb[29].mxu1 }
 0x1f1   :  { %v634_v1 = vadd.f32 %v1905_v25, %v633_v0  ;;  %v1486_v2 = vpop.f32.mrb[30].mxu1  ;;  %1527 = vmatprep.mubr.bf16.mxu0 %v692_v61 }
 0x1f2   :  { %v645_v3 = vadd.f32 %v1486_v2, %v1905_v25  ;;  %v636_v4 = vpop.f32.mrb[31].mxu1  ;;  %1528 = vmatmul.mubr.bf16.gmra.mrb[56].mxu0 %v693_v60  ;;  %v678_v6 = vmax.f32 %v642_v63, 0.0 }
 0x1f3   :  { %v637_v5 = vadd.f32 %v1905_v25, %v636_v4  ;;  %v676_v8 = vmax.f32 %v634_v1, 0.0  ;;  %v1642_v25 = vld [vmem:[%s2044_s7 + $0x38] sm:$0xff]  }
 0x1f4   :  { %v679_v7 = vmax.f32 %v645_v3, 0.0  ;;  %1549 = vmatprep.subr.bf16.mxu0 %v1642_v25  ;;  %1590 = vmatprep.subr.bf16.mxu1 %v1642_v25 }
 0x1f5   :  { %v677_v9 = vmax.f32 %v637_v5, 0.0  ;;  %1550 = vmatpush3.bf16.msra.mxu0 %v1642_v25  ;;  %1598 = vmatpush3.bf16.msra.mxu1 %v1642_v25 }
 0x1f6   :  { %v695_v10 = vpack.c.bf16 %v679_v7, %v678_v6 }
 0x1f7   :  { %v694_v11 = vpack.c.bf16 %v677_v9, %v676_v8 }
 0x1f9   :  { %1531 = vmatprep.mubr.bf16.mxu0 %v694_v11 }
 0x1fa   :  { %1532 = vmatmul.mubr.bf16.gmra.mrb[60].mxu0 %v695_v10 }
 0x295   :  { %v1505_v14 = vpop.f32.mrb[32].mxu0 }
 0x296   :  { %v810_v15 = vadd.f32 %v1505_v14, %v1954_v13  ;;  %v801_v16 = vpop.f32.mrb[33].mxu0 }
 0x297   :  { %v802_v17 = vadd.f32 %v1954_v13, %v801_v16  ;;  %v1506_v18 = vpop.f32.mrb[34].mxu0 }
 0x298   :  { %v813_v19 = vadd.f32 %v1506_v18, %v1954_v13  ;;  %v804_v20 = vpop.f32.mrb[35].mxu0  ;;  %v930_v21 = vmax.f32 %v810_v15, 0.0 }
 0x299   :  { %v805_v33 = vadd.f32 %v1954_v13, %v804_v20  ;;  %v928_v23 = vmax.f32 %v802_v17, 0.0 }
 0x29a   :  { %v931_v22 = vmax.f32 %v813_v19, 0.0 }
 0x29b   :  { %v929_v26 = vmax.f32 %v805_v33, 0.0 }
 0x29c   :  { %v961_v27 = vpack.c.bf16 %v931_v22, %v930_v21 }
 0x29d   :  { %v960_v28 = vpack.c.bf16 %v929_v26, %v928_v23  ;;  %v1509_v29 = vpop.f32.mrb[36].mxu0 }
 0x29e   :  { %v826_v30 = vadd.f32 %v1509_v29, %v1954_v13  ;;  %v817_v31 = vpop.f32.mrb[37].mxu0 }
 0x29f   :  { %v818_v32 = vadd.f32 %v1954_v13, %v817_v31  ;;  %v1510_v34 = vpop.f32.mrb[38].mxu0  ;;  %1551 = vmatprep.mubr.bf16.mxu0 %v960_v28 }
 0x2a0   :  { %v829_v24 = vadd.f32 %v1510_v34, %v1954_v13  ;;  %v820_v35 = vpop.f32.mrb[39].mxu0  ;;  %1552 = vmatmul.mubr.bf16.vlgmr.msra.gmra.mrb[64].mxu0 %v961_v27  ;;  %v934_v37 = vmax.f32 %v826_v30, 0.0 }
 0x2a1   :  { %v821_v36 = vadd.f32 %v1954_v13, %v820_v35  ;;  %v932_v39 = vmax.f32 %v818_v32, 0.0 }
 0x2a2   :  { %v935_v38 = vmax.f32 %v829_v24, 0.0 }
 0x2a3   :  { %v933_v40 = vmax.f32 %v821_v36, 0.0 }
 0x2a4   :  { %v963_v41 = vpack.c.bf16 %v935_v38, %v934_v37 }
 0x2a5   :  { %v962_v42 = vpack.c.bf16 %v933_v40, %v932_v39  ;;  %v1513_v43 = vpop.f32.mrb[40].mxu0 }
 0x2a6   :  { %v842_v44 = vadd.f32 %v1513_v43, %v1954_v13  ;;  %v833_v45 = vpop.f32.mrb[41].mxu0 }
 0x2a7   :  { %v834_v46 = vadd.f32 %v1954_v13, %v833_v45  ;;  %v1514_v47 = vpop.f32.mrb[42].mxu0  ;;  %1555 = vmatprep.mubr.bf16.mxu1 %v962_v42 }
 0x2a8   :  { %v845_v48 = vadd.f32 %v1514_v47, %v1954_v13  ;;  %v836_v49 = vpop.f32.mrb[43].mxu0  ;;  %1556 = vmatmul.mubr.bf16.vlgmr.msra.gmra.mrb[32].mxu1 %v963_v41  ;;  %v938_v51 = vmax.f32 %v842_v44, 0.0 }
 0x2a9   :  { %v837_v50 = vadd.f32 %v1954_v13, %v836_v49  ;;  %v936_v53 = vmax.f32 %v834_v46, 0.0 }
 0x2aa   :  { %v939_v52 = vmax.f32 %v845_v48, 0.0 }
 0x2ab   :  { %v937_v54 = vmax.f32 %v837_v50, 0.0 }
 0x2ac   :  { %v965_v55 = vpack.c.bf16 %v939_v52, %v938_v51 }
 0x2ad   :  { %v964_v56 = vpack.c.bf16 %v937_v54, %v936_v53  ;;  %v1517_v57 = vpop.f32.mrb[44].mxu0 }
 0x2ae   :  { %v858_v58 = vadd.f32 %v1517_v57, %v1954_v13  ;;  %v849_v59 = vpop.f32.mrb[45].mxu0 }
 0x2af   :  { %v850_v60 = vadd.f32 %v1954_v13, %v849_v59  ;;  %v1518_v61 = vpop.f32.mrb[46].mxu0  ;;  %1559 = vmatprep.mubr.bf16.mxu1 %v964_v56 }
 0x2b0   :  { %v861_v62 = vadd.f32 %v1518_v61, %v1954_v13  ;;  %v852_v63 = vpop.f32.mrb[47].mxu0  ;;  %1560 = vmatmul.mubr.bf16.gmra.mrb[36].mxu1 %v965_v55  ;;  %v942_v1 = vmax.f32 %v858_v58, 0.0 }
 0x2b1   :  { %v853_v0 = vadd.f32 %v1954_v13, %v852_v63  ;;  %v940_v3 = vmax.f32 %v850_v60, 0.0 }
 0x2b2   :  { %v943_v2 = vmax.f32 %v861_v62, 0.0 }
 0x2b3   :  { %v941_v4 = vmax.f32 %v853_v0, 0.0  ;;  %v1991_v0 = vld [vmem:[%s2045_s8] ss:$0 sm:$0xff]  ;;  %s1667_s8 = smov [#allocation2]  }
 0x2b4   :  { %v967_v5 = vpack.c.bf16 %v943_v2, %v942_v1  ;;  %s1245_s23 = sshll.u32 %s1667_s8, 4  ;;  %s1246_s23 = int_to_ptr.vmem [resolvable:$true] %s1245_s23 }
 0x2b5   :  { %v966_v6 = vpack.c.bf16 %v941_v4, %v940_v3  ;;  %v1521_v7 = vpop.f32.mrb[48].mxu0  ;;  %s1643_s24 = scalar_lea.vmem %s1246_s23, 4096  ;;  %p1648_p1 = scmp.lt.s32.totalorder %s1246_s23, %s1246_s23 }
 0x2b6   :  { %v874_v8 = vadd.f32 %v1521_v7, %v1954_v13  ;;  %v865_v9 = vpop.f32.mrb[49].mxu0  ;;  %p1644_p0 = scmp.ne.s32.totalorder %s1246_s23, %s1643_s24  ;;  %p1649_p2 = scmp.lt.s32.totalorder %s1643_s24, %s1643_s24 }
 0x2b7   :  { %v866_v10 = vadd.f32 %v1954_v13, %v865_v9  ;;  %v1522_v11 = vpop.f32.mrb[50].mxu0  ;;  %1563 = vmatprep.mubr.bf16.mxu1 %v966_v6 }
 0x2b8   :  { %v877_v12 = vadd.f32 %v1522_v11, %v1954_v13  ;;  %v868_v25 = vpop.f32.mrb[51].mxu0  ;;  %1564 = vmatmul.mubr.bf16.gmra.mrb[40].mxu1 %v967_v5  ;;  %v946_v15 = vmax.f32 %v874_v8, 0.0  ;;  %p1650_p3 = por %p1649_p2, %p1648_p1 }
 0x2b9   :  { %v869_v14 = vadd.f32 %v1954_v13, %v868_v25  ;;  %v944_v17 = vmax.f32 %v866_v10, 0.0 }
 0x2ba   :  { %v947_v16 = vmax.f32 %v877_v12, 0.0  ;;  %p1651_p4 = pnand %p1650_p3, %p1644_p0 }
 0x2bb   :  { %v945_v18 = vmax.f32 %v869_v14, 0.0 }
 0x2bc   :  { %v969_v19 = vpack.c.bf16 %v947_v16, %v946_v15 }
 0x2bd   :  { %v968_v20 = vpack.c.bf16 %v945_v18, %v944_v17  ;;  %v1525_v33 = vpop.f32.mrb[52].mxu0 }
 0x2be   :  { %v890_v21 = vadd.f32 %v1525_v33, %v1954_v13  ;;  %v881_v22 = vpop.f32.mrb[53].mxu0 }
 0x2bf   :  { %v882_v23 = vadd.f32 %v1954_v13, %v881_v22  ;;  %v1526_v26 = vpop.f32.mrb[54].mxu0  ;;  %1567 = vmatprep.mubr.bf16.mxu1 %v968_v20 }
 0x2c0   :  { %v893_v27 = vadd.f32 %v1526_v26, %v1954_v13  ;;  %v884_v28 = vpop.f32.mrb[55].mxu0  ;;  %1568 = vmatmul.mubr.bf16.gmra.mrb[44].mxu1 %v969_v19  ;;  %v950_v30 = vmax.f32 %v890_v21, 0.0 }
 0x2c1   :  { %v885_v29 = vadd.f32 %v1954_v13, %v884_v28  ;;  %v948_v32 = vmax.f32 %v882_v23, 0.0 }
 0x2c2   :  { %v951_v31 = vmax.f32 %v893_v27, 0.0 }
 0x2c3   :  { %v949_v34 = vmax.f32 %v885_v29, 0.0 }
 0x2c4   :  { %v971_v24 = vpack.c.bf16 %v951_v31, %v950_v30 }
 0x2c5   :  { %v970_v35 = vpack.c.bf16 %v949_v34, %v948_v32  ;;  %v1529_v36 = vpop.f32.mrb[56].mxu0 }
 0x2c6   :  { %v906_v37 = vadd.f32 %v1529_v36, %v1954_v13  ;;  %v897_v38 = vpop.f32.mrb[57].mxu0 }
 0x2c7   :  { %v898_v39 = vadd.f32 %v1954_v13, %v897_v38  ;;  %v1530_v40 = vpop.f32.mrb[58].mxu0  ;;  %1571 = vmatprep.mubr.bf16.mxu1 %v970_v35 }
 0x2c8   :  { %v909_v41 = vadd.f32 %v1530_v40, %v1954_v13  ;;  %v900_v42 = vpop.f32.mrb[59].mxu0  ;;  %1572 = vmatmul.mubr.bf16.gmra.mrb[48].mxu1 %v971_v24  ;;  %v954_v44 = vmax.f32 %v906_v37, 0.0 }
 0x2c9   :  { %v901_v43 = vadd.f32 %v1954_v13, %v900_v42  ;;  %v952_v46 = vmax.f32 %v898_v39, 0.0 }
 0x2ca   :  { %v955_v45 = vmax.f32 %v909_v41, 0.0 }
 0x2cb   :  { %v953_v47 = vmax.f32 %v901_v43, 0.0 }
 0x2cc   :  { %v973_v48 = vpack.c.bf16 %v955_v45, %v954_v44 }
 0x2cd   :  { %v972_v49 = vpack.c.bf16 %v953_v47, %v952_v46  ;;  %v1533_v50 = vpop.f32.mrb[60].mxu0 }
 0x2ce   :  { %v922_v51 = vadd.f32 %v1533_v50, %v1954_v13  ;;  %v913_v52 = vpop.f32.mrb[61].mxu0 }
 0x2cf   :  { %v914_v53 = vadd.f32 %v1954_v13, %v913_v52  ;;  %v1534_v54 = vpop.f32.mrb[62].mxu0  ;;  %1575 = vmatprep.mubr.bf16.mxu1 %v972_v49 }
 0x2d0   :  { %v925_v55 = vadd.f32 %v1534_v54, %v1954_v13  ;;  %v916_v56 = vpop.f32.mrb[63].mxu0  ;;  %1576 = vmatmul.mubr.bf16.gmra.mrb[52].mxu1 %v973_v48  ;;  %v958_v58 = vmax.f32 %v922_v51, 0.0 }
 0x2d1   :  { %v917_v57 = vadd.f32 %v1954_v13, %v916_v56  ;;  %v956_v60 = vmax.f32 %v914_v53, 0.0 }
 0x2d2   :  { %v959_v59 = vmax.f32 %v925_v55, 0.0 }
 0x2d3   :  { %v957_v61 = vmax.f32 %v917_v57, 0.0 }
 0x2d4   :  { %v975_v62 = vpack.c.bf16 %v959_v59, %v958_v58 }
 0x2d5   :  { %v974_v63 = vpack.c.bf16 %v957_v61, %v956_v60 }
 0x2d7   :  { %1579 = vmatprep.mubr.bf16.mxu1 %v974_v63 }
 0x2d8   :  { %1580 = vmatmul.mubr.bf16.gmra.mrb[56].mxu1 %v975_v62 }
 0x373   :  { %v1553_v1 = vpop.f32.mrb[64].mxu0 }
 0x374   :  { %v1090_v2 = vadd.f32 %v1553_v1, %v1991_v0  ;;  %v1081_v3 = vpop.f32.mrb[65].mxu0 }
 0x375   :  { %v1082_v4 = vadd.f32 %v1991_v0, %v1081_v3  ;;  %v1554_v13 = vpop.f32.mrb[66].mxu0 }
 0x376   :  { %1210 = vst [vmem:[#allocation2 + $0x10] sm:$0xff] %v1090_v2  ;;  %v1093_v5 = vadd.f32 %v1554_v13, %v1991_v0  ;;  %v1084_v6 = vpop.f32.mrb[67].mxu0 }
 0x377   :  { %1208 = vst [vmem:[#allocation2] sm:$0xff] %v1082_v4  ;;  %v1085_v7 = vadd.f32 %v1991_v0, %v1084_v6 }
 0x378   :  { %1211 = vst [vmem:[#allocation2 + $0x18] sm:$0xff] %v1093_v5 }
 0x379   :  { %1209 = vst [vmem:[#allocation2 + $0x8] sm:$0xff] %v1085_v7 }
 0x37b   :  { %v1557_v8 = vpop.f32.mrb[32].mxu1 }
 0x37c   :  { %v1106_v9 = vadd.f32 %v1557_v8, %v1991_v0  ;;  %v1097_v10 = vpop.f32.mrb[33].mxu1 }
 0x37d   :  { %v1098_v11 = vadd.f32 %v1991_v0, %v1097_v10  ;;  %v1558_v12 = vpop.f32.mrb[34].mxu1 }
 0x37e   :  { %1214 = vst [vmem:[#allocation2 + $0x30] sm:$0xff] %v1106_v9  ;;  %v1109_v25 = vadd.f32 %v1558_v12, %v1991_v0  ;;  %v1100_v14 = vpop.f32.mrb[35].mxu1 }
 0x37f   :  { %1212 = vst [vmem:[#allocation2 + $0x20] sm:$0xff] %v1098_v11  ;;  %v1101_v15 = vadd.f32 %v1991_v0, %v1100_v14 }
 0x380   :  { %1215 = vst [vmem:[#allocation2 + $0x38] sm:$0xff] %v1109_v25 }
 0x381   :  { %1213 = vst [vmem:[#allocation2 + $0x28] sm:$0xff] %v1101_v15 }
 0x383   :  { %v1561_v16 = vpop.f32.mrb[36].mxu1 }
 0x384   :  { %v1122_v17 = vadd.f32 %v1561_v16, %v1991_v0  ;;  %v1113_v18 = vpop.f32.mrb[37].mxu1 }
 0x385   :  { %v1114_v19 = vadd.f32 %v1991_v0, %v1113_v18  ;;  %v1562_v20 = vpop.f32.mrb[38].mxu1 }
 0x386   :  { %1218 = vst [vmem:[#allocation2 + $0x50] sm:$0xff] %v1122_v17  ;;  %v1125_v33 = vadd.f32 %v1562_v20, %v1991_v0  ;;  %v1116_v21 = vpop.f32.mrb[39].mxu1 }
 0x387   :  { %1216 = vst [vmem:[#allocation2 + $0x40] sm:$0xff] %v1114_v19  ;;  %v1117_v22 = vadd.f32 %v1991_v0, %v1116_v21 }
 0x388   :  { %1219 = vst [vmem:[#allocation2 + $0x58] sm:$0xff] %v1125_v33 }
 0x389   :  { %1217 = vst [vmem:[#allocation2 + $0x48] sm:$0xff] %v1117_v22 }
 0x38b   :  { %v1565_v23 = vpop.f32.mrb[40].mxu1 }
 0x38c   :  { %v1138_v26 = vadd.f32 %v1565_v23, %v1991_v0  ;;  %v1129_v27 = vpop.f32.mrb[41].mxu1 }
 0x38d   :  { %v1130_v28 = vadd.f32 %v1991_v0, %v1129_v27  ;;  %v1566_v29 = vpop.f32.mrb[42].mxu1 }
 0x38e   :  { %1222 = vst [vmem:[#allocation2 + $0x70] sm:$0xff] %v1138_v26  ;;  %v1141_v30 = vadd.f32 %v1566_v29, %v1991_v0  ;;  %v1132_v31 = vpop.f32.mrb[43].mxu1 }
 0x38f   :  { %1220 = vst [vmem:[#allocation2 + $0x60] sm:$0xff] %v1130_v28  ;;  %v1133_v32 = vadd.f32 %v1991_v0, %v1132_v31 }
 0x390   :  { %1223 = vst [vmem:[#allocation2 + $0x78] sm:$0xff] %v1141_v30 }
 0x391   :  { %1221 = vst [vmem:[#allocation2 + $0x68] sm:$0xff] %v1133_v32 }
 0x393   :  { %v1569_v34 = vpop.f32.mrb[44].mxu1 }
 0x394   :  { %v1154_v24 = vadd.f32 %v1569_v34, %v1991_v0  ;;  %v1145_v35 = vpop.f32.mrb[45].mxu1 }
 0x395   :  { %v1146_v36 = vadd.f32 %v1991_v0, %v1145_v35  ;;  %v1570_v37 = vpop.f32.mrb[46].mxu1 }
 0x396   :  { %1226 = vst [vmem:[#allocation2 + $0x90] sm:$0xff] %v1154_v24  ;;  %v1157_v38 = vadd.f32 %v1570_v37, %v1991_v0  ;;  %v1148_v39 = vpop.f32.mrb[47].mxu1 }
 0x397   :  { %1224 = vst [vmem:[#allocation2 + $0x80] sm:$0xff] %v1146_v36  ;;  %v1149_v40 = vadd.f32 %v1991_v0, %v1148_v39 }
 0x398   :  { %1227 = vst [vmem:[#allocation2 + $0x98] sm:$0xff] %v1157_v38 }
 0x399   :  { %1225 = vst [vmem:[#allocation2 + $0x88] sm:$0xff] %v1149_v40 }
 0x39b   :  { %v1573_v41 = vpop.f32.mrb[48].mxu1 }
 0x39c   :  { %v1170_v42 = vadd.f32 %v1573_v41, %v1991_v0  ;;  %v1161_v43 = vpop.f32.mrb[49].mxu1 }
 0x39d   :  { %v1162_v44 = vadd.f32 %v1991_v0, %v1161_v43  ;;  %v1574_v45 = vpop.f32.mrb[50].mxu1 }
 0x39e   :  { %1230 = vst [vmem:[#allocation2 + $0xb0] sm:$0xff] %v1170_v42  ;;  %v1173_v46 = vadd.f32 %v1574_v45, %v1991_v0  ;;  %v1164_v47 = vpop.f32.mrb[51].mxu1 }
 0x39f   :  { %1228 = vst [vmem:[#allocation2 + $0xa0] sm:$0xff] %v1162_v44  ;;  %v1165_v48 = vadd.f32 %v1991_v0, %v1164_v47 }
 0x3a0   :  { %1231 = vst [vmem:[#allocation2 + $0xb8] sm:$0xff] %v1173_v46 }
 0x3a1   :  { %1229 = vst [vmem:[#allocation2 + $0xa8] sm:$0xff] %v1165_v48 }
 0x3a3   :  { %v1577_v49 = vpop.f32.mrb[52].mxu1 }
 0x3a4   :  { %v1186_v50 = vadd.f32 %v1577_v49, %v1991_v0  ;;  %v1177_v51 = vpop.f32.mrb[53].mxu1 }
 0x3a5   :  { %v1178_v52 = vadd.f32 %v1991_v0, %v1177_v51  ;;  %v1578_v53 = vpop.f32.mrb[54].mxu1 }
 0x3a6   :  { %1234 = vst [vmem:[#allocation2 + $0xd0] sm:$0xff] %v1186_v50  ;;  %v1189_v54 = vadd.f32 %v1578_v53, %v1991_v0  ;;  %v1180_v55 = vpop.f32.mrb[55].mxu1 }
 0x3a7   :  { %1232 = vst [vmem:[#allocation2 + $0xc0] sm:$0xff] %v1178_v52  ;;  %v1181_v56 = vadd.f32 %v1991_v0, %v1180_v55 }
 0x3a8   :  { %1235 = vst [vmem:[#allocation2 + $0xd8] sm:$0xff] %v1189_v54 }
 0x3a9   :  { %1233 = vst [vmem:[#allocation2 + $0xc8] sm:$0xff] %v1181_v56 }
 0x3ab   :  { %v1581_v57 = vpop.f32.mrb[56].mxu1 }
 0x3ac   :  { %v1202_v58 = vadd.f32 %v1581_v57, %v1991_v0  ;;  %v1193_v59 = vpop.f32.mrb[57].mxu1 }
 0x3ad   :  { %v1194_v60 = vadd.f32 %v1991_v0, %v1193_v59  ;;  %v1582_v61 = vpop.f32.mrb[58].mxu1 }
 0x3ae   :  { %1238 = vst [vmem:[#allocation2 + $0xf0] sm:$0xff] %v1202_v58  ;;  %v1205_v62 = vadd.f32 %v1582_v61, %v1991_v0  ;;  %v1196_v63 = vpop.f32.mrb[59].mxu1 }
 0x3af   :  { %1236 = vst [vmem:[#allocation2 + $0xe0] sm:$0xff] %v1194_v60  ;;  %v1197_v1 = vadd.f32 %v1991_v0, %v1196_v63 }
 0x3b0   :  { %1239 = vst [vmem:[#allocation2 + $0xf8] sm:$0xff] %v1205_v62 }
 0x3b1   :  { %1237 = vst [vmem:[#allocation2 + $0xe8] sm:$0xff] %v1197_v1 }
 0x3b2   :  { %1654 = shalt.err (!%p1651_p4)
}
 0x3b3   :  { %s1655_s27 = scalar_lea.hbm %s2046_s9, 4096 }
 0x3b4   :  { %p1656_p5 = scmp.ne.s32.totalorder %s2046_s9, %s1655_s27  ;;  %p1659_p6 = scmp.lt.u32.totalorder %s1655_s27, %s2046_s9 }
 0x3b6   :  { %p1661_p7 = pnand %p1659_p6, %p1656_p5 }
 0x3b8   :  { %1664 = shalt.err (!%p1661_p7)
}
 0x3b9   :  { %s1668_s10 = smov 128   ;;  %s1669_s11 = smov 8  }
 0x3ba   :  { %1251 = dma.vmem_to_hbm [thread:$0]  %s1246_s23, 4096, %s2046_s9, [#allocation3], %s1668_s10, %s1668_s10, %s1669_s11  }
 0x3bb   :  { %1665 = dma.done.wait [#allocation3], 4096  }
 0x3bc   :  { %1666 = vsyncadd [#allocation3], 4294963200 }
 0x3bd   :  { %1255 = vsyncpa [#allocation3], 1 }

</bundles_post_ra>
